<compile_context>
chip_gen: v7x
topology: tpu7x:2x2x1
jax: 0.10.0
libtpu: 0.0.40
codegen_flags: <defaults>
</compile_context>

<pallas_src>
from functools import partial

import jax
import jax.numpy as jnp
from jax.experimental import pallas as pl
from jax.experimental.pallas import tpu as pltpu

_SUB, _LANE = 8, 128  # vreg sublane / lane extents


def _focal_loss_kernel(gamma, x_ref, t_ref, a_ref, out_ref):
    # Zero this core's partial-sum block at the start of its reduction loop.
    @pl.when(pl.program_id(1) == 0)
    def _():
        out_ref[...] = jnp.zeros_like(out_ref)

    x = x_ref[...].astype(jnp.float32)          # (TILE_N, C) logits
    t = t_ref[...]                              # (TILE_N, 1) int32 targets
    a = a_ref[...].astype(jnp.float32)          # (TILE_N, 1) per-example alpha (0 on pad rows)

    # log-softmax of the target class only (no full softmax divide).
    m = jnp.max(x, axis=1, keepdims=True)                                  # (TILE_N, 1)
    se = jnp.sum(jnp.exp(x - m), axis=1, keepdims=True)                    # (TILE_N, 1)
    col = jax.lax.broadcasted_iota(jnp.int32, x.shape, 1)                  # (TILE_N, C)
    x_t = jnp.sum(jnp.where(col == t, x, 0.0), axis=1, keepdims=True)      # (TILE_N, 1)
    log_p = (x_t - m) - jnp.log(se)                                        # (TILE_N, 1)
    probs = jnp.exp(log_p)

    q = 1.0 - probs
    g = float(gamma)
    if g == 2.0:
        pw = q * q                      # VPU only; EUP already busy with exp
    elif g == 1.0:
        pw = q
    elif g == 0.0:
        pw = jnp.ones_like(q)
    else:
        pw = jnp.exp(g * jnp.log1p(-probs))

    batch_loss = -a * pw * log_p                                           # (TILE_N, 1)

    # Accumulate the tile SUM (broadcast scalar into the resident (8,128) block).
    out_ref[...] += jnp.sum(batch_loss)


def focal_loss(inputs, targets, alpha=None, gamma=2.0, size_average=True,
               tile_n=512, num_cores=2):
    """inputs: (N, C) float logits; targets: (N,) int; alpha: (C,) or (C,1) float."""
    inputs = jnp.asarray(inputs, jnp.float32)
    N, C = inputs.shape
    targets = jnp.asarray(targets, jnp.int32)
    if alpha is None:
        alpha = jnp.full((C,), 0.25, dtype=jnp.float32)  # module default
    alpha = jnp.asarray(alpha, jnp.float32).reshape(-1)

    # Hoist the alpha gather out of the (N, C) kernel path.
    a_ex = jnp.take(alpha, targets, axis=0).reshape(N, 1)
    t2d = targets.reshape(N, 1)

    # Row tile: multiple of 8 sublanes, capped so tiles stay tiny vs. the
    # scoped VMEM budget (32 MiB default; 64 MiB physical on v7x).
    tile_n = int(min(int(tile_n), max(8, ((N + 7) // 8) * 8)))
    tile_n = ((tile_n + 7) // 8) * 8
    tiles = pl.cdiv(N, tile_n)
    tiles = ((tiles + num_cores - 1) // num_cores) * num_cores
    tiles_per_core = tiles // num_cores
    n_pad = tiles * tile_n

    pad = n_pad - N
    if pad:
        x_p = jnp.pad(inputs, ((0, pad), (0, 0)))
        t_p = jnp.pad(t2d, ((0, pad), (0, 0)))      # target 0 on pad rows (valid index)
        a_p = jnp.pad(a_ex, ((0, pad), (0, 0)))     # alpha 0 -> pad rows contribute 0
    else:
        x_p, t_p, a_p = inputs, t2d, a_ex

    kernel = partial(_focal_loss_kernel, float(gamma))
    row_map = lambda c, i: (c * tiles_per_core + i, 0)

    partials = pl.pallas_call(
        kernel,
        out_shape=jax.ShapeDtypeStruct((num_cores * _SUB, _LANE), jnp.float32),
        grid_spec=pltpu.PrefetchScalarGridSpec(
            num_scalar_prefetch=0,
            grid=(num_cores, tiles_per_core),
            in_specs=[
                pl.BlockSpec((tile_n, C), row_map),
                pl.BlockSpec((tile_n, 1), row_map),
                pl.BlockSpec((tile_n, 1), row_map),
            ],
            out_specs=pl.BlockSpec((_SUB, _LANE), lambda c, i: (c, 0)),
        ),
        compiler_params=pltpu.CompilerParams(
            dimension_semantics=("parallel", "arbitrary")),
    )(x_p, t_p, a_p)

    total = jnp.sum(partials[::_SUB, 0])            # one partial sum per core
    if size_average:
        return total / jnp.float32(N)
    return total


if __name__ == "__main__":
    key = jax.random.PRNGKey(0)
    N, C = 24, 16                 # small batch of 24 examples, 16 classes
    k1, k2 = jax.random.split(key)

    inputs = jax.random.normal(k1, (N, C), dtype=jnp.float32)         # logits
    targets = jax.random.randint(k2, (N,), 0, C, dtype=jnp.int32)     # class ids

    # Case 1: module defaults (alpha = 0.25 for every class, gamma = 2, mean).
    loss = focal_loss(inputs, targets, alpha=None, gamma=2.0,
                      size_average=True, tile_n=8)   # tile_n=8 exercises multi-tile accumulation
    loss = jax.block_until_ready(loss)

    p = jax.nn.softmax(inputs, axis=1)
    probs = p[jnp.arange(N), targets]
    ref = jnp.mean(-0.25 * (1.0 - probs) ** 2.0 * jnp.log(probs))
    assert jnp.allclose(loss, ref, rtol=1e-5, atol=1e-6), (loss, ref)

    # Case 2: non-uniform alpha, size_average=False (sum reduction).
    alpha = jnp.linspace(0.1, 0.9, C, dtype=jnp.float32)
    loss2 = focal_loss(inputs, targets, alpha=alpha, gamma=2.0,
                       size_average=False, tile_n=8)
    loss2 = jax.block_until_ready(loss2)
    ref2 = jnp.sum(-alpha[targets] * (1.0 - probs) ** 2.0 * jnp.log(probs))
    assert jnp.allclose(loss2, ref2, rtol=1e-5, atol=1e-5), (loss2, ref2)

    print("KERNEL_OK")
</pallas_src>

<mosaic_0001>
module attributes {stable_mosaic.version = 11 : i64} {
  func.func @_focal_loss_kernel(%arg0: i32, %arg1: i32, %arg2: memref<8x16xf32, #tpu.memory_space<vmem>>, %arg3: memref<8x1xi32, #tpu.memory_space<vmem>>, %arg4: memref<8x1xf32, #tpu.memory_space<vmem>>, %arg5: memref<8x128xf32, #tpu.memory_space<vmem>>) attributes {dimension_semantics = [#tpu.dimension_semantics<parallel>, #tpu.dimension_semantics<arbitrary>], iteration_bounds = array<i64: 2, 2>, scalar_prefetch = 0 : i64, scratch_operands = 0 : i64, tpu.core_type = #tpu.core_type<tc>, window_params = [{transform_indices = @transform_0, window_bounds = array<i64: 8, 16>}, {transform_indices = @transform_1, window_bounds = array<i64: 8, 1>}, {transform_indices = @transform_2, window_bounds = array<i64: 8, 1>}, {transform_indices = @transform_3, window_bounds = array<i64: 8, 128>}]} {
    %c0_i32 = arith.constant 0 : i32
    %0 = arith.cmpi eq, %arg1, %c0_i32 : i32
    %1 = arith.extui %0 : i1 to i32
    %c0_i32_0 = arith.constant 0 : i32
    %2 = arith.cmpi ne, %1, %c0_i32_0 : i32
    scf.if %2 {
      %cst_16 = arith.constant 0.000000e+00 : f32
      %39 = vector.broadcast %cst_16 : f32 to vector<8x128xf32>
      %c0_17 = arith.constant 0 : index
      %c0_18 = arith.constant 0 : index
      %40 = vector.load %arg5[%c0_17, %c0_18] : memref<8x128xf32, #tpu.memory_space<vmem>>, vector<8x128xf32>
      tpu.vector_store %arg5[%c0_17, %c0_18], %39 {strides = array<i32>} : memref<8x128xf32, #tpu.memory_space<vmem>>, vector<8x128xf32>,
    } else {
    }
    %c0 = arith.constant 0 : index
    %c0_1 = arith.constant 0 : index
    %3 = vector.load %arg2[%c0, %c0_1] : memref<8x16xf32, #tpu.memory_space<vmem>>, vector<8x16xf32>
    %c0_2 = arith.constant 0 : index
    %c0_3 = arith.constant 0 : index
    %4 = vector.load %arg3[%c0_2, %c0_3] : memref<8x1xi32, #tpu.memory_space<vmem>>, vector<8x1xi32>
    %c0_4 = arith.constant 0 : index
    %c0_5 = arith.constant 0 : index
    %5 = vector.load %arg4[%c0_4, %c0_5] : memref<8x1xf32, #tpu.memory_space<vmem>>, vector<8x1xf32>
    %cst = arith.constant dense<0xFF800000> : vector<8xf32>
    %6 = vector.multi_reduction <maximumf>, %3, %cst [1] : vector<8x16xf32> to vector<8xf32>
    %7 = vector.shape_cast %6 : vector<8xf32> to vector<8x1xf32>
    %8 = vector.broadcast %7 : vector<8x1xf32> to vector<8x16xf32>
    %9 = arith.subf %3, %8 : vector<8x16xf32>
    %10 = math.exp %9 : vector<8x16xf32>
    %cst_6 = arith.constant dense<0.000000e+00> : vector<8xf32>
    %11 = vector.multi_reduction <add>, %10, %cst_6 [1] : vector<8x16xf32> to vector<8xf32>
    %12 = vector.shape_cast %11 : vector<8xf32> to vector<8x1xf32>
    %13 = tpu.iota {dimensions = array<i32: 1>} : vector<8x16xi32>
    %14 = vector.broadcast %4 : vector<8x1xi32> to vector<8x16xi32>
    %15 = arith.cmpi eq, %13, %14 : vector<8x16xi32>
    %cst_7 = arith.constant 0.000000e+00 : f32
    %16 = vector.broadcast %cst_7 : f32 to vector<8x16xf32>
    %17 = arith.select %15, %3, %16 : vector<8x16xi1>, vector<8x16xf32>
    %cst_8 = arith.constant dense<0.000000e+00> : vector<8xf32>
    %18 = vector.multi_reduction <add>, %17, %cst_8 [1] : vector<8x16xf32> to vector<8xf32>
    %19 = vector.shape_cast %18 : vector<8xf32> to vector<8x1xf32>
    %20 = arith.subf %19, %7 : vector<8x1xf32>
    %21 = math.log %12 : vector<8x1xf32>
    %22 = arith.subf %20, %21 : vector<8x1xf32>
    %23 = math.exp %22 : vector<8x1xf32>
    %cst_9 = arith.constant 1.000000e+00 : f32
    %24 = vector.broadcast %cst_9 : f32 to vector<8x1xf32>
    %25 = arith.subf %24, %23 : vector<8x1xf32>
    %26 = arith.mulf %25, %25 : vector<8x1xf32>
    %cst_10 = arith.constant 0.000000e+00 : f32
    %27 = vector.broadcast %cst_10 : f32 to vector<8x1xf32>
    %28 = arith.subf %27, %5 : vector<8x1xf32>
    %29 = arith.mulf %28, %26 : vector<8x1xf32>
    %30 = arith.mulf %29, %22 : vector<8x1xf32>
    %c0_11 = arith.constant 0 : index
    %c0_12 = arith.constant 0 : index
    %31 = vector.load %arg5[%c0_11, %c0_12] : memref<8x128xf32, #tpu.memory_space<vmem>>, vector<8x128xf32>
    %32 = vector.shape_cast %30 : vector<8x1xf32> to vector<1x8x1xf32>
    %cst_13 = arith.constant dense<0.000000e+00> : vector<1xf32>
    %33 = vector.multi_reduction <add>, %32, %cst_13 [1, 2] : vector<1x8x1xf32> to vector<1xf32>
    %34 = vector.shape_cast %33 : vector<1xf32> to vector<1x1x1xf32>
    %35 = vector.extract %34[0, 0, 0] : f32 from vector<1x1x1xf32>
    %36 = vector.broadcast %35 : f32 to vector<8x128xf32>
    %37 = arith.addf %31, %36 : vector<8x128xf32>
    %c0_14 = arith.constant 0 : index
    %c0_15 = arith.constant 0 : index
    %38 = vector.load %arg5[%c0_14, %c0_15] : memref<8x128xf32, #tpu.memory_space<vmem>>, vector<8x128xf32>
    tpu.vector_store %arg5[%c0_14, %c0_15], %37 {strides = array<i32>} : memref<8x128xf32, #tpu.memory_space<vmem>>, vector<8x128xf32>,
    return
  }
  func.func @transform_0(%arg0: i32, %arg1: i32) -> (i32, i32) {
    %c2_i32 = arith.constant 2 : i32
    %0 = arith.muli %arg0, %c2_i32 : i32
    %1 = arith.addi %0, %arg1 : i32
    %c0_i32 = arith.constant 0 : i32
    %c0_i32_0 = arith.constant 0 : i32
    return %1, %c0_i32 : i32, i32
  }
  func.func @transform_1(%arg0: i32, %arg1: i32) -> (i32, i32) {
    %c2_i32 = arith.constant 2 : i32
    %0 = arith.muli %arg0, %c2_i32 : i32
    %1 = arith.addi %0, %arg1 : i32
    %c0_i32 = arith.constant 0 : i32
    %c0_i32_0 = arith.constant 0 : i32
    return %1, %c0_i32 : i32, i32
  }
  func.func @transform_2(%arg0: i32, %arg1: i32) -> (i32, i32) {
    %c2_i32 = arith.constant 2 : i32
    %0 = arith.muli %arg0, %c2_i32 : i32
    %1 = arith.addi %0, %arg1 : i32
    %c0_i32 = arith.constant 0 : i32
    %c0_i32_0 = arith.constant 0 : i32
    return %1, %c0_i32 : i32, i32
  }
  func.func @transform_3(%arg0: i32, %arg1: i32) -> (i32, i32) {
    %c0_i32 = arith.constant 0 : i32
    %c0_i32_0 = arith.constant 0 : i32
    return %arg0, %c0_i32 : i32, i32
  }
}

</mosaic_0001>

<bundles_post_ra>
// kernel: tpu_custom_call.1
= control target key start
LH: loop header
LB: loop body
LE: loop exit
PB: predicated region body
PF: predicated region fallthrough
CT: control target
= control target key end

     0   :  { %8 = vsyncpa [#allocation3], 0  ;;  %s802_s0 = inlined_call_operand.vmem [shape: f32[32,16], index: 0, kind: input, shape index: {}]   ;;  %s803_s1 = inlined_call_operand.vmem [shape: s32[32,1], index: 1, kind: input, shape index: {}]   ;;  %s804_s2 = inlined_call_operand.vmem [shape: f32[32,1], index: 2, kind: input, shape index: {}]   ;;  %s805_s3 = inlined_call_operand.hbm [shape: f32[16,128], index: 3, kind: output, shape index: {}]  }
   0x1   :  { %10 = vsyncpa [#allocation3 + $0x1], 0  ;;  %s640_s12 = smov 0   ;;  %s642_s13 = smov 0  }
   0x2   :  { %s644_s14 = smov 0   ;;  %s646_s15 = smov 0  }
   0x3   :  { %s648_s16 = smov 0   ;;  %s650_s17 = smov 0  }
   0x4   :  { %s652_s18 = smov 0   ;;  %s654_s19 = smov 0  }
   0x5 LB: > { %s416_s20 = sadd.s32 4294967295, %s615_s19   ;;  %s417_s21 = sadd.s32 4294967294, %s615_s19   ;;  %s615_s19 = sphi %s654_s19, %s16_s19   ;;  %s611_s18 = sphi %s652_s18, %s814_s18   ;;  %s607_s17 = sphi %s650_s17, %s813_s17   ;;  %s603_s16 = sphi %s648_s16, %s812_s16   ;;  %s599_s15 = sphi %s646_s15, %s811_s15   ;;  %s595_s14 = sphi %s644_s14, %s810_s14   ;;  %s591_s13 = sphi %s642_s13, %s809_s13   ;;  %s587_s12 = sphi %s640_s12, %s808_s12  }
   0x6   : > { %s25_s22 = sadd.s32 1, %s607_s17  ;;  %s28_s23 = sadd.s32 1, %s611_s18 }
   0x7   : > { %p26_p0 = scmp.ge.s32.totalorder %s25_s22, 2  ;;  %p135_p1 = scmp.ne.s32.totalorder %s595_s14, %s591_s13 }
   0x8   : > { %p136_p2 = scmp.eq.s32.totalorder %s416_s20, 3  ;;  %p141_p4 = scmp.ne.s32.totalorder %s591_s13, %s587_s12 }
   0x9   : > { %s816_s22 = smov (%p26_p0, %s25_s22), 0  ;;  %s818_s23 = smov (!%p26_p0, %s28_s23), %s611_s18 }
   0xa   : > { %p689_p3 = por %p136_p2, %p135_p1  ;;  %p30_p5 = scmp.ge.s32.totalorder %s818_s23, 2 }
   0xb   : > { %p142_p6 = scmp.eq.s32.totalorder %s417_s21, 3  ;;  %p426_p7 = scmp.ge.s32.totalorder %s615_s19, 1 }
   0xc   : > { %p193_p8 = scmp.lt.s32.totalorder %s615_s19, 5  ;;  %s820_s23 = smov (%p30_p5, %s818_s23), 0 }
   0xd   : > { %p699_p9 = por %p142_p6, %p141_p4  ;;  %s122_s26 = ssub.s32 %s611_s18, %s820_s23 }
   0xe   : > { %p194_p10 = pnand %p426_p7, %p193_p8  ;;  %s125_s27 = sadd.s32 1, %s595_s14 }
   0xf   : > { %p123_p11 = scmp.eq.s32.totalorder %s122_s26, 0  ;;  %s227_s29 = sand.u32 (!%p194_p10), 1, %s591_s13  }
  0x10   : > { %197 = sbr.rel (%p194_p10) target bundleno = 590 (0x24e), region = 32  ;;  %s428_s30 = sshll.u32 (!%p194_p10), %s603_s16, 1 }
  0x11   : > { %s707_s28 = scalar_select %p123_p11, %s595_s14, %s125_s27  }
  0x12   : > { %s427_s4 = sshll.u32 (!%p194_p10), %s227_s29, 3  ;;  %s231_s5 = sadd.s32 (!%p194_p10), %s599_s15, %s428_s30 }
  0x13   : > { %p232_p12 = scmp.lt.s32.totalorder (!%p194_p10), %s231_s5, 3  ;;  %s728_s30 = scalar_lea.vmem (!%p194_p10), [#allocation2], %s427_s4 }
  0x14   : > { %p434_p13 = scmp.ne.s32.totalorder (!%p194_p10), %s599_s15, 0 }
  0x17   : > { %s822_s5 = smov (!%p232_p12, %s231_s5), 3  ;;  %257 = sbr.rel (%p434_p13) target bundleno = 30 (0x1e), region = 36 }
  0x18   : > { %s714_s6 = sshll.u32 %s822_s5, 3  ;;  %v617_v0 = vmov (!%p434_p13), 0.0  }
  0x19   : > { %s235_s9 = scalar_lea.vmem %s802_s0, %s714_s6  ;;  %s243_s20 = scalar_lea.vmem %s803_s1, %s714_s6  ;;  %258 = vst [vmem:[%s728_s30] sm:$0xff] (!%p434_p13), %v617_v0 }
  0x1a   : > { %s251_s27 = scalar_lea.vmem %s804_s2, %s714_s6 }
  0x1e PF: > { %v259_v1 = vld [vmem:[%s235_s9] sm:$0xff]  ;;  %vm262_vm0 = vcmask 130048   ;;  %v618_v3 = vmov 0   ;;  %v272_v8 = vlaneseq  ;;  %vm294_vm2 = vcmask 7168   ;;  %s436_s5 = sshll.u32 %s603_s16, 7  ;;  %s322_s6 = sshll.u32 %s728_s30, 4  ;;  %s748_s6 = int_to_ptr.vmem [resolvable:$true] %s322_s6 }
  0x1f   : > { %v263_v2 = vsel %vm262_vm0, %v259_v1, -inf  ;;  %514 = vset.pattern.permute.xlu0 %v618_v3  ;;  %v260_v4 = vld [vmem:[%s243_s20] sm:$0xff]  ;;  %s746_s10 = scalar_lea.hbm %s805_s3, %s436_s5  ;;  %s309_s11 = scalar_lea.sflag [#allocation3], %s227_s29 }
  0x20   : > { %264 = vmax.xlane.f32.xlu0 %v263_v2  ;;  %v273_v9 = vand.u32 127, %v272_v8  ;;  %v261_v22 = vld [vmem:[%s251_s27] sm:$0xff]  ;;  %s521_s20 = scalar_lea.vmem %s748_s6, 128  ;;  %s619_s16 = smov [#allocation2]  }
  0x21   : > { %v290_v25 = vsub.f32 0.0, %v261_v22  ;;  %v293_v37 = vld [vmem:[%s728_s30] sm:$0xff]  ;;  %p522_p0 = scmp.ne.s32.totalorder %s748_s6, %s521_s20  ;;  %s525_s21 = sshll.u32 %s619_s16, 4  ;;  %s526_s21 = int_to_ptr.vmem [resolvable:$false] %s525_s21 }
  0x22   : > { %s527_s26 = scalar_lea.vmem %s526_s21, 256  ;;  %p528_p4 = scmp.lt.s32.totalorder %s748_s6, %s526_s21 }
  0x23   : > { %p523_p1 = pnand %p522_p0, %p689_p3  ;;  %p529_p5 = scmp.lt.s32.totalorder %s527_s26, %s521_s20 }
  0x25   : > { %p524_p2 = pneg %p523_p1  ;;  %p530_p6 = por %p529_p5, %p528_p4 }
  0x27   : > { %p531_p7 = pnand %p530_p6, %p524_p2 }
  0x36   : > { %275 = vperm.xlu0 %514, %v260_v4  }
  0xad   : > { %v265_v5 = vpop.xlane.xlu0 %264 }
  0xae   : > { %v266_v6 = vsub.f32 %v259_v1, %v265_v5 }
  0xb0   : > { %v267_v7 = vmul.f32 1.442695, %v266_v6 }
  0xb2   : > { %515 = vpow2.f32 %v267_v7 }
  0xb5   : > { %v276_v10 = vpop.permute.xlu0 %275 }
  0xb6   : > { %vm277_vm1 = vcmp.eq.s32.totalorder %v273_v9, %v276_v10 }
  0xb7   : > { %v278_v12 = vsel %vm277_vm1, %v259_v1, 0.0 }
  0xb8   : > { %v279_v14 = vsel %vm262_vm0, %v278_v12, 0.0 }
  0xbc   : > { %v516_v11 = vpop.eup %515 }
  0xbd   : > { %v269_v13 = vsel %vm262_vm0, %v516_v11, 0.0 }
  0xbe   : > { %270 = vadd.xlane.f32.xlu1 %v269_v13 }
  0xc2   : > { %280 = vadd.xlane.f32.xlu1 %v279_v14 }
 0x14b   : > { %v271_v15 = vpop.xlane.xlu1 %270 }
 0x14c   : > { %517 = vlog2.f32 %v271_v15 }
 0x14f   : > { %v281_v16 = vpop.xlane.xlu1 %280 }
 0x150   : > { %v282_v19 = vsub.f32 %v281_v16, %v265_v5 }
 0x156   : > { %v518_v17 = vpop.eup %517 }
 0x157   : > { %v284_v18 = vmul.f32 0.6931472, %v518_v17 }
 0x159   : > { %v285_v20 = vsub.f32 %v282_v19, %v284_v18 }
 0x15b   : > { %v286_v21 = vmul.f32 1.442695, %v285_v20 }
 0x15d   : > { %519 = vpow2.f32 %v286_v21 }
 0x167   : > { %v520_v23 = vpop.eup %519 }
 0x168   : > { %v288_v24 = vsub.f32 1.0, %v520_v23 }
 0x16a   : > { %v289_v26 = vmul.f32 %v288_v24, %v288_v24 }
 0x16c   : > { %v291_v27 = vmul.f32 %v290_v25, %v289_v26 }
 0x16e   : > { %v292_v28 = vmul.f32 %v291_v27, %v285_v20 }
 0x170   : > { %v295_v29 = vsel %vm294_vm2, %v292_v28, 0.0 }
 0x171   : > { %296 = vadd.xlane.f32.xlu1 %v295_v29 }
 0x1fe   : > { %v297_v30 = vpop.xlane.xlu1 %296 }
 0x1ff   : > { %v298_v31 = vrot.slane %v297_v30, 4 }
 0x201   : > { %v299_v32 = vadd.f32 %v298_v31, %v297_v30 }
 0x203   : > { %v300_v33 = vrot.slane %v299_v32, 2 }
 0x205   : > { %v301_v34 = vadd.f32 %v300_v33, %v299_v32 }
 0x207   : > { %v302_v35 = vrot.slane %v301_v34, 1 }
 0x209   : > { %v303_v36 = vadd.f32 %v302_v35, %v301_v34 }
 0x20b   : > { %439 = vpush %v303_v36 }
 0x23c   : > { %s440_s7 = spop %439 }
 0x23d   : > { %v305_v38 = vstv %s440_s7 }
 0x23e   : > { %v306_v39 = vadd.f32 %v305_v38, %v293_v37 }
 0x240   : > { %307 = vst [vmem:[%s728_s30] sm:$0xff] %v306_v39 }
 0x241   : > { %534 = shalt.err (!%p531_p7)
}
 0x242   : > { %s535_s29 = scalar_lea.hbm %s746_s10, 128  ;;  %s539_s15 = scalar_lea.hbm %s805_s3, 256 }
 0x243   : > { %p536_p8 = scmp.ne.s32.totalorder %s746_s10, %s535_s29  ;;  %p540_p12 = scmp.lt.u32.totalorder %s746_s10, %s805_s3 }
 0x244   : > { %p541_p13 = scmp.lt.u32.totalorder %s539_s15, %s535_s29  ;;  %p543_p1 = scmp.lt.u32.totalorder %s535_s29, %s746_s10 }
 0x245   : > { %p537_p10 = pnand %p536_p8, %p689_p3 }
 0x246   : > { %p542_p0 = por %p541_p13, %p540_p12 }
 0x247   : > { %p538_p11 = pneg %p537_p10 }
 0x248   : > { %p544_p2 = por %p543_p1, %p542_p0 }
 0x24a   : > { %p545_p4 = pnand %p544_p2, %p538_p11 }
 0x24c   : > { %548 = shalt.err (!%p545_p4)
}
 0x24d   : > { %441 = dma.vmem_to_hbm [thread:$0]  (%p689_p3), %s748_s6, 128, %s746_s10, %s309_s11  }
 0x24e PF: > { %p447_p5 = scmp.ge.s32.totalorder %s615_s19, 2  ;;  %s334_s7 = sand.u32 1, %s587_s12  }
 0x24f   : > { %s335_s8 = scalar_lea.sflag [#allocation3], %s334_s7 }
 0x250   : > { %p444_p6 = pnand %p447_p5, %p699_p9 }
 0x252   : > { %582 = dma.done.wait (!%p444_p6), %s335_s8, 128  }
 0x253   : > { %584 = vsyncadd (!%p444_p6), %s335_s8, 4294967168  ;;  %s16_s19 = sadd.s32 1, %s615_s19   ;;  %s808_s12 = smov %s591_s13 }
 0x254   : > { %p13_p7 = scmp.ge.s32.totalorder %s16_s19, 6   ;;  %s809_s13 = smov %s595_s14 }
 0x255   : > { %s810_s14 = smov %s707_s28  ;;  %s811_s15 = smov %s607_s17 }
 0x256   : > { %s812_s16 = smov %s611_s18  ;;  %s813_s17 = smov %s816_s22 }
 0x257   : > { %s814_s18 = smov %s820_s23  ;;  %15 = sbr.rel (!%p13_p7) target bundleno = 5 (0x5), region = 77 }
 0x25e   :  { %340 = vsyncpa [#allocation3], 1 }
 0x25f   :  { %342 = vsyncpa [#allocation3 + $0x1], 1 }

</bundles_post_ra>
